<compile_context>
chip_gen: v6e
topology: v6e:2x2x1
jax: 0.10.0
libtpu: 0.0.40
codegen_flags: <defaults>
</compile_context>

<pallas_src>
import functools

import jax
import jax.numpy as jnp
from jax.experimental import pallas as pl
from jax.experimental.pallas import tpu as pltpu


def _round_up(x, m):
    return (x + m - 1) // m * m


@functools.lru_cache(maxsize=1)
def _tpu_config():
    """Generation-dependent tile / VMEM / dtype defaults."""
    kind = ""
    try:
        kind = jax.devices()[0].device_kind.lower()
    except Exception:
        pass
    vmem_cap = None
    try:
        vmem_cap = int(pltpu.get_tpu_info().vmem_capacity_bytes)
    except Exception:
        pass
    if vmem_cap is None:
        vmem_cap = 64 * 2**20 if "v7" in kind else 128 * 2**20
    # Scoped-VMEM budget: generous on 128 MiB parts, capped well under v7x's 64 MiB.
    vmem_limit = min(int(vmem_cap * 0.7), 64 * 2**20)
    use_bf16 = ("v6" in kind) or ("v7" in kind)   # v5e has no bf16 VPU/EUP -> keep f32
    two_core = ("v7" in kind) or ("v4" in kind) or ("v5p" in kind)
    if "v7" in kind:
        tm, tk = 1024, 2048        # ~2 MiB int8 mask/step; fits 64 MiB VMEM comfortably
    elif ("v6" in kind) or ("v5" in kind):
        tm, tk = 2048, 2048        # ~4 MiB mask/step; ~14-17 MiB total working set
    else:
        tm, tk = 1024, 1024        # conservative fallback
    return dict(kind=kind, vmem_limit=vmem_limit, use_bf16=use_bf16,
                two_core=two_core, tm=tm, tk=tk)


# ---------------------------------------------------------------------------
# Phase 1: node projection.  h_aug = x @ [W | W@att_src | W@att_dst | 0...],
# with one spare padding column forced to 1.0 (softmax denominator via the MXU).
# ---------------------------------------------------------------------------
def _proj_kernel(x_ref, w_ref, h_ref, *, col_one):
    h = jnp.dot(x_ref[...], w_ref[...], preferred_element_type=jnp.float32)
    lane = jax.lax.broadcasted_iota(jnp.int32, h.shape, 1)
    h = jnp.where(lane == col_one, 1.0, h)        # ones column -> denominator column
    h_ref[...] = h.astype(h_ref.dtype)            # lane-dense store (bf16 on v6e/v7x)


# ---------------------------------------------------------------------------
# Phase 2: masked attention with a flash-style online softmax over src tiles.
# Grid = (dst tiles [parallel], src tiles [arbitrary reduction, last]).
# ---------------------------------------------------------------------------
def _gat_attn_kernel(a_dst_ref, a_src_ref, mask_ref, h_ref, bias_ref, out_ref,
                     m_scr, acc_scr, *, col_one):
    k = pl.program_id(1)

    @pl.when(k == 0)
    def _():
        m_scr[...] = jnp.full_like(m_scr, -1e30)
        acc_scr[...] = jnp.zeros_like(acc_scr)

    cdt = a_src_ref.dtype                          # compute dtype (bf16 on v6e/v7x)

    # e_ij = LeakyReLU(a_dst_i + a_src_j, 0.2).  Softmax is shift-invariant, so the
    # running max over the UNMASKED logits is a valid upper bound -> no -1e30 select.
    z = a_dst_ref[...] + a_src_ref[...]            # [tm,1] + [1,tk] -> [tm,tk]
    z = jnp.maximum(z, 0.2 * z)                    # LeakyReLU (2 VPU ops)

    m_prev = m_scr[...]                            # f32 [tm,1]
    m_new = jnp.maximum(m_prev,
                        jnp.max(z, axis=-1, keepdims=True).astype(jnp.float32))
    e = jnp.exp(z - m_new.astype(cdt))             # EUP
    p = jnp.where(mask_ref[...] != 0, e, jnp.zeros_like(e))   # single mask select

    scale = jnp.exp(m_prev - m_new)                # f32 [tm,1]
    # p @ h accumulates both the numerator AND (via the ones column of h) the
    # softmax denominator in f32 on the MXU.
    acc_scr[...] = scale * acc_scr[...] + jnp.dot(
        p.astype(h_ref.dtype), h_ref[...], preferred_element_type=jnp.float32)
    m_scr[...] = m_new

    @pl.when(k == pl.num_programs(1) - 1)
    def _():
        l = acc_scr[:, col_one:col_one + 1]        # denominator column, f32 [tm,1]
        r = pl.reciprocal(l, approx=True)          # EUP slot
        r = r * (2.0 - l * r)                      # one Newton step -> ~f32 accuracy
        inv = jnp.where(l > 0.0, r, 0.0)           # targets with no incoming edge -> bias
        out_ref[...] = (acc_scr[...] * inv + bias_ref[...]).astype(out_ref.dtype)


def gat_forward(x, edge_index, num_target, params, *, tm=None, tk=None, use_bf16=None):
    """Pallas equivalent of GAT.forward(x, adjs, device) with adjs[0] == edge_index
    and adjs[-1][1] == num_target (targets are the first num_target rows of x)."""
    n_src, f_in = x.shape
    d = params["w"].shape[1]

    cfg = _tpu_config()
    if use_bf16 is None:
        use_bf16 = cfg["use_bf16"]
    h_dtype = jnp.bfloat16 if use_bf16 else jnp.float32

    d_pad = _round_up(d, 128)
    # Fold the 2 attention-logit columns + 1 ones-column into the lane padding of h;
    # if d is (nearly) lane-dense, spill into one extra 128-lane block instead.
    d_work = d_pad if d_pad - d >= 3 else d_pad + 128
    col_src, col_dst, col_one = d, d + 1, d + 2

    # ---- generation-dependent tile selection ----
    if tm is None:
        tm = cfg["tm"]
        if cfg["two_core"] and num_target >= 512:
            # keep >= 2 dst tiles so the "parallel" axis can shard across TensorCores
            tm = min(tm, _round_up(-(-num_target // 2), 32))
    if tk is None:
        tk = cfg["tk"]
    tm = min(_round_up(tm, 32), _round_up(max(num_target, 1), 32))    # int8 sublane tile
    tk = min(_round_up(tk, 128), _round_up(max(n_src, 1), 128))       # lane tile

    n_src_pad = _round_up(n_src, tk)
    n_dst_pad = _round_up(num_target, tm)

    # ---- parameters / padded inputs ----
    w = params["w"].astype(jnp.float32)
    att_src = params["att_src"].reshape(d).astype(jnp.float32)
    att_dst = params["att_dst"].reshape(d).astype(jnp.float32)

    w_aug = jnp.zeros((f_in, d_work), jnp.float32)
    w_aug = w_aug.at[:, :d].set(w)
    w_aug = w_aug.at[:, col_src].set(w @ att_src)
    w_aug = w_aug.at[:, col_dst].set(w @ att_dst)
    bias_pad = jnp.zeros((1, d_work), jnp.float32).at[:, :d].set(
        params["bias"].reshape(1, d))

    x_pad = jnp.zeros((n_src_pad, f_in), jnp.float32).at[:n_src].set(
        x.astype(jnp.float32))

    # Dense adjacency mask as int8; mask[i, j] = 1 iff edge j -> i.
    mask = jnp.zeros((n_dst_pad, n_src_pad), jnp.int8)
    mask = mask.at[edge_index[1], edge_index[0]].set(1)

    # ---- Phase 1: projection (tiled over node rows, run once) ----
    tr = tk
    h_full = pl.pallas_call(
        functools.partial(_proj_kernel, col_one=col_one),
        out_shape=jax.ShapeDtypeStruct((n_src_pad, d_work), h_dtype),
        grid=(n_src_pad // tr,),
        in_specs=[
            pl.BlockSpec((tr, f_in), lambda i: (i, 0)),       # x row tile
            pl.BlockSpec((f_in, d_work), lambda i: (0, 0)),   # W_aug (resident)
        ],
        out_specs=pl.BlockSpec((tr, d_work), lambda i: (i, 0)),
        compiler_params=pltpu.CompilerParams(
            dimension_semantics=("parallel",),
            vmem_limit_bytes=cfg["vmem_limit"]),
    )(x_pad, w_aug)

    # Tiny glue: per-source logits as a lane vector, per-target logits as a sublane vector.
    a_src_row = h_full[:, col_src].reshape(1, n_src_pad)
    a_dst_col = jnp.pad(h_full[:num_target, col_dst:col_dst + 1],
                        ((0, n_dst_pad - num_target), (0, 0)))

    # ---- Phase 2: tiled masked softmax + aggregation ----
    out = pl.pallas_call(
        functools.partial(_gat_attn_kernel, col_one=col_one),
        out_shape=jax.ShapeDtypeStruct((n_dst_pad, d_work), jnp.float32),
        grid=(n_dst_pad // tm, n_src_pad // tk),
        in_specs=[
            pl.BlockSpec((tm, 1), lambda i, k: (i, 0)),        # a_dst (per target row)
            pl.BlockSpec((1, tk), lambda i, k: (0, k)),        # a_src (per source col)
            pl.BlockSpec((tm, tk), lambda i, k: (i, k)),       # int8 adjacency tile
            pl.BlockSpec((tk, d_work), lambda i, k: (k, 0)),   # h source tile
            pl.BlockSpec((1, d_work), lambda i, k: (0, 0)),    # bias
        ],
        out_specs=pl.BlockSpec((tm, d_work), lambda i, k: (i, 0)),
        scratch_shapes=[
            pltpu.VMEM((tm, 1), jnp.float32),        # running max
            pltpu.VMEM((tm, d_work), jnp.float32),   # running numerator + denom column
        ],
        compiler_params=pltpu.CompilerParams(
            dimension_semantics=("parallel", "arbitrary"),
            vmem_limit_bytes=cfg["vmem_limit"]),
    )(a_dst_col, a_src_row, mask, h_full, bias_pad)

    return out[:num_target, :d]


def _ref_gat(x, edge_index, num_target, params):
    """Pure-JAX reference (dense-mask formulation of GATConv)."""
    n_src = x.shape[0]
    mask = jnp.zeros((num_target, n_src), jnp.float32)
    mask = mask.at[edge_index[1], edge_index[0]].set(1.0)
    h = x @ params["w"]
    h_dst = h[:num_target]
    a_s = (h * params["att_src"]).sum(-1)
    a_d = (h_dst * params["att_dst"]).sum(-1)
    z = a_d[:, None] + a_s[None, :]
    z = jnp.where(z > 0.0, z, 0.2 * z)
    z = jnp.where(mask > 0, z, -1e30)
    m = z.max(-1, keepdims=True)
    p = jnp.where(mask > 0, jnp.exp(z - m), 0.0)
    den = p.sum(-1, keepdims=True)
    attn = jnp.where(den > 0, p / den, 0.0)
    return attn @ h + params["bias"]


if __name__ == "__main__":
    cfg = _tpu_config()

    def run_case(n_src, n_dst, in_dim, out_dim, density, *, tm=None, tk=None,
                 use_bf16=None, atol=2e-3, rtol=2e-3):
        key = jax.random.PRNGKey(0)
        k_x, k_w, k_as, k_ad, k_b, k_e = jax.random.split(key, 6)
        lim_w = (6.0 / (in_dim + out_dim)) ** 0.5
        lim_a = (6.0 / (1 + out_dim)) ** 0.5
        params = {
            "w": jax.random.uniform(k_w, (in_dim, out_dim), jnp.float32, -lim_w, lim_w),
            "att_src": jax.random.uniform(k_as, (1, out_dim), jnp.float32, -lim_a, lim_a),
            "att_dst": jax.random.uniform(k_ad, (1, out_dim), jnp.float32, -lim_a, lim_a),
            "bias": 0.1 * jax.random.normal(k_b, (1, out_dim), jnp.float32),
        }
        x = jax.random.normal(k_x, (n_src, in_dim), jnp.float32)
        # Random bipartite graph (edge j -> i, i < n_dst); targets are first n_dst rows of x.
        adj = jax.random.bernoulli(k_e, density, (n_dst, n_src))
        dst_idx, src_idx = jnp.nonzero(adj)
        edge_index = jnp.stack([src_idx, dst_idx]).astype(jnp.int32)   # [2, E]

        out = gat_forward(x, edge_index, n_dst, params, tm=tm, tk=tk, use_bf16=use_bf16)
        out = jax.block_until_ready(out)
        ref = _ref_gat(x, edge_index, n_dst, params)
        assert out.shape == (n_dst, out_dim)
        assert jnp.allclose(out, ref, atol=atol, rtol=rtol), "mismatch vs JAX reference"

    # 1) Small mini-batch consistent with the module (in_dim=8, out_dim=32, heads=1,
    #    16 source nodes, first 8 are the targets), using the auto (generation-tuned)
    #    tile/dtype config.  Tolerance is widened when bf16 h/logits are auto-selected.
    tol = 4e-2 if cfg["use_bf16"] else 2e-3
    run_case(n_src=16, n_dst=8, in_dim=8, out_dim=32, density=0.3, atol=tol, rtol=tol)

    # 2) Multi-tile path in forced-f32 mode: grid = (3 dst tiles, 3 src tiles),
    #    exercises the online softmax across src tiles at tight tolerance.
    run_case(n_src=300, n_dst=96, in_dim=8, out_dim=32, density=0.05,
             tm=32, tk=128, use_bf16=False, atol=2e-3, rtol=2e-3)

    print("KERNEL_OK")
</pallas_src>

<mosaic_0001>
module attributes {stable_mosaic.version = 11 : i64} {
  func.func @_proj_kernel(%arg0: i32, %arg1: memref<128x8xf32, #tpu.memory_space<vmem>>, %arg2: memref<8x128xf32, #tpu.memory_space<vmem>>, %arg3: memref<128x128xf32, #tpu.memory_space<vmem>>) attributes {dimension_semantics = [#tpu.dimension_semantics<parallel>], iteration_bounds = array<i64: 1>, scalar_prefetch = 0 : i64, scratch_operands = 0 : i64, tpu.core_type = #tpu.core_type<tc>, window_params = [{transform_indices = @transform_0, window_bounds = array<i64: 128, 8>}, {pipeline_mode = #tpu.pipeline_mode<synchronous>, transform_indices = @transform_1, window_bounds = array<i64: 8, 128>}, {transform_indices = @transform_2, window_bounds = array<i64: 128, 128>}]} {
    %c0 = arith.constant 0 : index
    %c0_0 = arith.constant 0 : index
    %0 = vector.load %arg1[%c0, %c0_0] : memref<128x8xf32, #tpu.memory_space<vmem>>, vector<128x8xf32>
    %c0_1 = arith.constant 0 : index
    %c0_2 = arith.constant 0 : index
    %1 = vector.load %arg2[%c0_1, %c0_2] : memref<8x128xf32, #tpu.memory_space<vmem>>, vector<8x128xf32>
    %cst = arith.constant dense<0.000000e+00> : vector<128x128xf32>
    %2 = tpu.matmul %0, %1, %cst {dimension_numbers = #tpu.dot_dimension_numbers<[1], [0], [0], [1], [0, 0, 1, 1], [], []>} : vector<128x8xf32>, vector<8x128xf32>, vector<128x128xf32> -> vector<128x128xf32>
    %3 = tpu.iota {dimensions = array<i32: 1>} : vector<128x128xi32>
    %c34_i32 = arith.constant 34 : i32
    %4 = vector.broadcast %c34_i32 : i32 to vector<128x128xi32>
    %5 = arith.cmpi eq, %3, %4 : vector<128x128xi32>
    %cst_3 = arith.constant 1.000000e+00 : f32
    %6 = vector.broadcast %cst_3 : f32 to vector<128x128xf32>
    %7 = arith.select %5, %6, %2 : vector<128x128xi1>, vector<128x128xf32>
    %c0_4 = arith.constant 0 : index
    %c0_5 = arith.constant 0 : index
    %8 = vector.load %arg3[%c0_4, %c0_5] : memref<128x128xf32, #tpu.memory_space<vmem>>, vector<128x128xf32>
    tpu.vector_store %arg3[%c0_4, %c0_5], %7 {strides = array<i32>} : memref<128x128xf32, #tpu.memory_space<vmem>>, vector<128x128xf32>,
    return
  }
  func.func @transform_0(%arg0: i32) -> (i32, i32) {
    %c0_i32 = arith.constant 0 : i32
    %c0_i32_0 = arith.constant 0 : i32
    return %arg0, %c0_i32 : i32, i32
  }
  func.func @transform_1(%arg0: i32) -> (i32, i32) {
    %c0_i32 = arith.constant 0 : i32
    %c0_i32_0 = arith.constant 0 : i32
    %c0_i32_1 = arith.constant 0 : i32
    return %c0_i32, %c0_i32_0 : i32, i32
  }
  func.func @transform_2(%arg0: i32) -> (i32, i32) {
    %c0_i32 = arith.constant 0 : i32
    %c0_i32_0 = arith.constant 0 : i32
    return %arg0, %c0_i32 : i32, i32
  }
}

</mosaic_0001>

<bundles_post_ra>
// kernel: tpu_custom_call.1
= control target key start
LH: loop header
LB: loop body
LE: loop exit
PB: predicated region body
PF: predicated region fallthrough
CT: control target
= control target key end

     0   :  { %vm29_vm0 = vcmask 64512   ;;  %s464_s0 = inlined_call_operand.vmem [shape: f32[128,8], index: 0, kind: input, shape index: {}]   ;;  %s465_s1 = inlined_call_operand.vmem [shape: f32[8,128], index: 1, kind: input, shape index: {}]   ;;  %s466_s2 = inlined_call_operand.hbm [shape: f32[128,128], index: 2, kind: output, shape index: {}]  }
   0x1   :  { %v28_v0 = vld [vmem:[%s465_s1] sm:$0xff]  ;;  %v13_v3 = vld [vmem:[%s464_s0 + $0x8] sm:$0xff]  ;;  %v14_v5 = vld [vmem:[%s464_s0 + $0x10] sm:$0xff] }
   0x2   :  { %v12_v1 = vld [vmem:[%s464_s0] sm:$0xff]  ;;  %307 = vmatprep.subr.mxu0 %v28_v0  ;;  %333 = vmatprep.subr.mxu1 %v28_v0  ;;  %v21_v4 = vld [vmem:[%s464_s0 + $0x48] sm:$0xff]  ;;  %v22_v6 = vld [vmem:[%s464_s0 + $0x50] sm:$0xff] }
   0x3   :  { %v20_v2 = vld [vmem:[%s464_s0 + $0x40] sm:$0xff]  ;;  %308 = vmatpush3.msra.mxu0 %v28_v0  ;;  %334 = vmatpush3.msra.mxu1 %v28_v0  ;;  %v15_v7 = vld [vmem:[%s464_s0 + $0x18] sm:$0xff] }
   0x4   :  { %309 = vmatprep.mubr.msk.f32.mxu0 %vm29_vm0, %v12_v1  ;;  %321 = vmatprep.mubr.msk.f32.mxu1 %vm29_vm0, %v20_v2  ;;  %v23_v8 = vld [vmem:[%s464_s0 + $0x58] sm:$0xff] }
   0x5   :  { %310 = vmatmul.mubr.msk.f32.vlgmr.msra.gmra.mxu0 %vm29_vm0, %v13_v3  ;;  %322 = vmatmul.mubr.msk.f32.vlgmr.msra.gmra.mxu1 %vm29_vm0, %v21_v4 }
   0x6   :  { %312 = vmatprep.mubr.msk.f32.mxu0 %vm29_vm0, %v14_v5  ;;  %324 = vmatprep.mubr.msk.f32.mxu1 %vm29_vm0, %v22_v6 }
   0x7   :  { %7 = vsyncpa [#allocation3], 0  ;;  %v16_v9 = vld [vmem:[%s464_s0 + $0x20] sm:$0xff]  ;;  %v17_v11 = vld [vmem:[%s464_s0 + $0x28] sm:$0xff]  ;;  %v223_v17 = vlaneseq }
   0x8   :  { %v24_v10 = vld [vmem:[%s464_s0 + $0x60] sm:$0xff]  ;;  %v25_v12 = vld [vmem:[%s464_s0 + $0x68] sm:$0xff]  ;;  %v18_v13 = vld [vmem:[%s464_s0 + $0x30] sm:$0xff] }
   0x9   :  { %313 = vmatmul.mubr.msk.f32.gmra.mxu0 %vm29_vm0, %v15_v7  ;;  %325 = vmatmul.mubr.msk.f32.gmra.mxu1 %vm29_vm0, %v23_v8  ;;  %v26_v14 = vld [vmem:[%s464_s0 + $0x70] sm:$0xff]  ;;  %v19_v15 = vld [vmem:[%s464_s0 + $0x38] sm:$0xff]  ;;  %v224_v18 = vand.u32 127, %v223_v17 }
   0xa   :  { %315 = vmatprep.mubr.msk.f32.mxu0 %vm29_vm0, %v16_v9  ;;  %327 = vmatprep.mubr.msk.f32.mxu1 %vm29_vm0, %v24_v10  ;;  %v27_v16 = vld [vmem:[%s464_s0 + $0x78] sm:$0xff]  ;;  %s360_s0 = smov [#allocation2]  }
   0xb   :  { %vm225_vm1 = vcmp.eq.s32.totalorder %v224_v18, 34  ;;  %s263_s14 = sshll.u32 %s360_s0, 4  ;;  %s264_s14 = int_to_ptr.vmem [resolvable:$true] %s263_s14 }
   0xc   :  { %s338_s15 = scalar_lea.vmem %s264_s14, 2048  ;;  %p343_p1 = scmp.lt.s32.totalorder %s264_s14, %s264_s14 }
   0xd   :  { %316 = vmatmul.mubr.msk.f32.gmra.mxu0 %vm29_vm0, %v17_v11  ;;  %328 = vmatmul.mubr.msk.f32.gmra.mxu1 %vm29_vm0, %v25_v12  ;;  %p339_p0 = scmp.ne.s32.totalorder %s264_s14, %s338_s15  ;;  %p344_p2 = scmp.lt.s32.totalorder %s338_s15, %s338_s15 }
   0xe   :  { %318 = vmatprep.mubr.msk.f32.mxu0 %vm29_vm0, %v18_v13  ;;  %330 = vmatprep.mubr.msk.f32.mxu1 %vm29_vm0, %v26_v14 }
   0xf   :  { %p345_p3 = por %p344_p2, %p343_p1 }
  0x11   :  { %319 = vmatmul.mubr.msk.f32.gmra.mxu0 %vm29_vm0, %v19_v15  ;;  %331 = vmatmul.mubr.msk.f32.gmra.mxu1 %vm29_vm0, %v27_v16  ;;  %p346_p4 = pnand %p345_p3, %p339_p0 }
  0xc5   :  { %v311_v19 = vpop.f32.mrf.mxu0  ;;  %v323_v20 = vpop.f32.mrf.mxu1 }
  0xc6   :  { %v227_v21 = vsel %vm225_vm1, 1.0, %v311_v19  ;;  %v235_v22 = vsel %vm225_vm1, 1.0, %v323_v20 }
  0xc7   :  { %243 = vst [vmem:[#allocation2 + $0x8] sm:$0xff] %v227_v21  ;;  %251 = vst [vmem:[#allocation2 + $0x48] sm:$0xff] %v235_v22  ;;  %v144_v23 = vpop.f32.mrf.mxu0  ;;  %v184_v24 = vpop.f32.mrf.mxu1 }
  0xc8   :  { %v226_v25 = vsel %vm225_vm1, 1.0, %v144_v23  ;;  %v234_v26 = vsel %vm225_vm1, 1.0, %v184_v24 }
  0xc9   :  { %242 = vst [vmem:[#allocation2] sm:$0xff] %v226_v25  ;;  %250 = vst [vmem:[#allocation2 + $0x40] sm:$0xff] %v234_v26  ;;  %v314_v27 = vpop.f32.mrf.mxu0  ;;  %v326_v28 = vpop.f32.mrf.mxu1 }
  0xca   :  { %v229_v29 = vsel %vm225_vm1, 1.0, %v314_v27  ;;  %v237_v30 = vsel %vm225_vm1, 1.0, %v326_v28 }
  0xcb   :  { %245 = vst [vmem:[#allocation2 + $0x18] sm:$0xff] %v229_v29  ;;  %253 = vst [vmem:[#allocation2 + $0x58] sm:$0xff] %v237_v30  ;;  %v154_v31 = vpop.f32.mrf.mxu0  ;;  %v194_v32 = vpop.f32.mrf.mxu1 }
  0xcc   :  { %v228_v33 = vsel %vm225_vm1, 1.0, %v154_v31  ;;  %v236_v34 = vsel %vm225_vm1, 1.0, %v194_v32 }
  0xcd   :  { %244 = vst [vmem:[#allocation2 + $0x10] sm:$0xff] %v228_v33  ;;  %252 = vst [vmem:[#allocation2 + $0x50] sm:$0xff] %v236_v34  ;;  %v317_v35 = vpop.f32.mrf.mxu0  ;;  %v329_v36 = vpop.f32.mrf.mxu1 }
  0xce   :  { %v231_v37 = vsel %vm225_vm1, 1.0, %v317_v35  ;;  %v239_v38 = vsel %vm225_vm1, 1.0, %v329_v36 }
  0xcf   :  { %247 = vst [vmem:[#allocation2 + $0x28] sm:$0xff] %v231_v37  ;;  %255 = vst [vmem:[#allocation2 + $0x68] sm:$0xff] %v239_v38  ;;  %v164_v39 = vpop.f32.mrf.mxu0  ;;  %v204_v40 = vpop.f32.mrf.mxu1 }
  0xd0   :  { %v230_v41 = vsel %vm225_vm1, 1.0, %v164_v39  ;;  %v238_v42 = vsel %vm225_vm1, 1.0, %v204_v40 }
  0xd1   :  { %246 = vst [vmem:[#allocation2 + $0x20] sm:$0xff] %v230_v41  ;;  %254 = vst [vmem:[#allocation2 + $0x60] sm:$0xff] %v238_v42  ;;  %v320_v43 = vpop.f32.mrf.mxu0  ;;  %v332_v44 = vpop.f32.mrf.mxu1 }
  0xd2   :  { %v233_v45 = vsel %vm225_vm1, 1.0, %v320_v43  ;;  %v241_v46 = vsel %vm225_vm1, 1.0, %v332_v44 }
  0xd3   :  { %249 = vst [vmem:[#allocation2 + $0x38] sm:$0xff] %v233_v45  ;;  %257 = vst [vmem:[#allocation2 + $0x78] sm:$0xff] %v241_v46  ;;  %v174_v47 = vpop.f32.mrf.mxu0  ;;  %v214_v48 = vpop.f32.mrf.mxu1 }
  0xd4   :  { %v232_v49 = vsel %vm225_vm1, 1.0, %v174_v47  ;;  %v240_v50 = vsel %vm225_vm1, 1.0, %v214_v48 }
  0xd5   :  { %248 = vst [vmem:[#allocation2 + $0x30] sm:$0xff] %v232_v49  ;;  %256 = vst [vmem:[#allocation2 + $0x70] sm:$0xff] %v240_v50 }
  0xd6   :  { %349 = shalt.err (!%p346_p4)
}
  0xd7   :  { %s361_s16 = smov 128   ;;  %s362_s17 = smov 8  }
  0xd8   :  { %269 = dma.vmem_to_hbm [thread:$0]  %s264_s14, 2048, %s466_s2, [#allocation3], %s361_s16, %s361_s16, %s362_s17  }
  0xd9   :  { %358 = dma.done.wait [#allocation3], 2048  }
  0xda   :  { %359 = vsyncadd [#allocation3], 4294965248 }
  0xdb   :  { %273 = vsyncpa [#allocation3], 1 }

</bundles_post_ra>
